<compile_context>
chip_gen: v7x
topology: tpu7x:2x2x1
jax: 0.10.0
libtpu: 0.0.40
codegen_flags: <defaults>
</compile_context>

<pallas_src>
import functools

import jax
import jax.numpy as jnp
from jax.experimental import pallas as pl
from jax.experimental.pallas import tpu as pltpu


def _ntd_loss_kernel(logits_ref, dg_ref, targets_ref, out_ref, *, tau, beta, batch):
    i = pl.program_id(0)
    C, TB = logits_ref.shape

    # Load in native dtype, then `.long()` emulation: float -> s32 truncates
    # toward zero, compute proceeds in f32 on the integer-valued logits.
    logits = logits_ref[...].astype(jnp.int32).astype(jnp.float32)   # (C, TB)
    dg = dg_ref[...].astype(jnp.int32).astype(jnp.float32)           # (C, TB)
    tgt = targets_ref[...]                                           # (1, TB) int32

    cls = jax.lax.broadcasted_iota(jnp.int32, (C, TB), 0)            # class ids on sublanes
    is_true = cls == tgt                                             # (C, TB) bool
    neg_big = jnp.float32(-1e30)   # finite sentinel: exp()->0, no 0*inf NaNs
    inv_tau = jnp.float32(1.0 / tau)

    # Ragged-tile mask: global batch index of each lane.
    col = jax.lax.broadcasted_iota(jnp.int32, (1, TB), 1) + i * TB
    valid = col < batch                                              # (1, TB)

    # ---- CrossEntropyLoss per column (no (C,TB) log-softmax temporary) ----
    # ce_b = lse_b - logits[target_b, b]
    m = jnp.max(logits, axis=0, keepdims=True)                       # (1, TB)
    lse = jnp.log(jnp.sum(jnp.exp(logits - m), axis=0, keepdims=True)) + m
    true_logit = jnp.sum(jnp.where(is_true, logits, 0.0), axis=0, keepdims=True)
    ce_col = lse - true_logit                                        # (1, TB)

    # ---- Not-true distillation (tempered, target row masked out) ----
    nt_logits = jnp.where(is_true, neg_big, logits * inv_tau)
    nt_dg = jnp.where(is_true, neg_big, dg * inv_tau)

    # Student: reuse the CE max (scaled) as a safe upper-bound shift (exp <= 1).
    m1 = m * inv_tau
    s1 = jnp.sum(jnp.exp(nt_logits - m1), axis=0, keepdims=True)
    lse1 = jnp.log(s1) + m1

    # Teacher: single unmasked max over dg as the shift; reuse exp as the
    # softmax numerator (no extra full-size exp).
    m2 = jnp.max(dg, axis=0, keepdims=True) * inv_tau
    e2 = jnp.exp(nt_dg - m2)
    s2 = jnp.sum(e2, axis=0, keepdims=True)
    lse2 = jnp.log(s2) + m2

    # EUP approx reciprocal + one Newton step (exact to f32 roundoff).
    r = pl.reciprocal(s2, approx=True)
    r = r * (jnp.float32(2.0) - s2 * r)
    dg_p = e2 * r

    # KLDiv integrand without logp temporaries:
    #   dg_p * (dg_logp - pred_logp) = dg_p * ((nt_dg - nt_logits) + (lse1 - lse2))
    diff = (nt_dg - nt_logits) + (lse1 - lse2)
    kl_col = jnp.sum(jnp.where(is_true, 0.0, dg_p * diff), axis=0, keepdims=True)

    per_col = ce_col + jnp.float32(beta * tau * tau) * kl_col        # (1, TB)
    partial = jnp.sum(jnp.where(valid, per_col, 0.0))

    # Lane-dense per-tile partial (wrapper sums and divides by B).
    out_ref[...] = jnp.broadcast_to(partial, out_ref.shape)


def _pick_batch_tile(B, C, itemsize, *, vmem_budget_bytes=8 << 20, max_tile=8192):
    """Lane-dense (C, TB) tiles: budget accounts for sublane padding of the
    class dim, 2 inputs x 2 pipeline buffers, and the padded int32 target row."""
    c_pad = ((C + 7) // 8) * 8
    per_col = 4 * c_pad * itemsize + 2 * 8 * 4
    cap = max(128, (vmem_budget_bytes // per_col) // 128 * 128)
    limit = min(cap, max_tile)
    if B <= limit:
        return B              # whole batch in one step (block == full array dims)
    return limit              # multiple of 128; cdiv grid + in-kernel mask


def ntd_loss(logits, targets, dg_logits, *, num_classes=10, tau=3.0, beta=1.0):
    """Pallas implementation of NTD_Loss.forward. Returns a scalar f32."""
    assert logits.shape[1] == num_classes
    B, C = logits.shape
    itemsize = jnp.dtype(logits.dtype).itemsize
    TB = _pick_batch_tile(B, C, itemsize)
    G = pl.cdiv(B, TB)

    # Lane-dense layout: class on sublanes, batch on lanes. Inputs stay in
    # their native dtype (widened on load inside the kernel).
    logits_t = jnp.transpose(logits)                   # (C, B)
    dg_t = jnp.transpose(dg_logits)                    # (C, B)
    tgt = targets.astype(jnp.int32).reshape(1, B)      # (1, B)

    kernel = functools.partial(
        _ntd_loss_kernel, tau=float(tau), beta=float(beta), batch=B)

    cost = pl.CostEstimate(
        flops=int(25 * B * C),
        transcendentals=int(3 * B * C + 3 * B),
        bytes_accessed=int(2 * B * C * itemsize + B * 4 + G * 8 * 128 * 4),
    )

    out = pl.pallas_call(
        kernel,
        out_shape=jax.ShapeDtypeStruct((G, 8, 128), jnp.float32),
        grid=(G,),
        in_specs=[
            pl.BlockSpec((C, TB), lambda i: (0, i)),
            pl.BlockSpec((C, TB), lambda i: (0, i)),
            pl.BlockSpec((1, TB), lambda i: (0, i)),
        ],
        out_specs=pl.BlockSpec((1, 8, 128), lambda i: (i, 0, 0)),
        compiler_params=pltpu.CompilerParams(
            dimension_semantics=("parallel",)),
        cost_estimate=cost,
    )(logits_t, dg_t, tgt)

    # Tiny wrapper-side reduce over per-tile partials, then mean over batch.
    return jnp.sum(out[:, 0, 0]) * jnp.float32(1.0 / B)


def _ntd_loss_ref(logits, targets, dg_logits, *, num_classes=10, tau=3.0, beta=1.0):
    """Pure-JAX reference mirroring the PyTorch graph (for sanity checking)."""
    B, C = logits.shape
    logits = jnp.trunc(logits.astype(jnp.float32))
    dg = jnp.trunc(dg_logits.astype(jnp.float32))
    tgt = targets.astype(jnp.int32)

    logp = jax.nn.log_softmax(logits, axis=1)
    ce = -jnp.mean(logp[jnp.arange(B), tgt])

    mask = jnp.arange(C)[None, :] != tgt[:, None]
    nt_logits = logits[mask].reshape(B, C - 1)
    nt_dg = dg[mask].reshape(B, C - 1)
    pred_logp = jax.nn.log_softmax(nt_logits / tau, axis=1)
    dg_p = jax.nn.softmax(nt_dg / tau, axis=1)
    kl = jnp.sum(dg_p * (jnp.log(dg_p) - pred_logp)) / B
    return ce + beta * (tau * tau) * kl


if __name__ == "__main__":
    num_classes = 10
    B = 8
    key = jax.random.PRNGKey(0)
    k1, k2, k3 = jax.random.split(key, 3)

    # Integer-ish logits (the module casts to .long() anyway).
    logits = jax.random.normal(k1, (B, num_classes), dtype=jnp.float32) * 5.0
    dg_logits = jax.random.normal(k2, (B, num_classes), dtype=jnp.float32) * 5.0
    targets = jax.random.randint(k3, (B,), 0, num_classes, dtype=jnp.int32)

    loss = ntd_loss(logits, targets, dg_logits, num_classes=num_classes, tau=3.0, beta=1.0)
    loss = jax.block_until_ready(loss)

    ref = _ntd_loss_ref(logits, targets, dg_logits, num_classes=num_classes, tau=3.0, beta=1.0)
    assert jnp.isfinite(loss), "loss is not finite"
    assert jnp.allclose(loss, ref, rtol=1e-4, atol=1e-4), (loss, ref)

    print("KERNEL_OK")
</pallas_src>

<mosaic_0001>
module attributes {stable_mosaic.version = 11 : i64} {
  func.func @_ntd_loss_kernel(%arg0: i32, %arg1: memref<10x8xf32, #tpu.memory_space<vmem>>, %arg2: memref<10x8xf32, #tpu.memory_space<vmem>>, %arg3: memref<1x8xi32, #tpu.memory_space<vmem>>, %arg4: memref<1x8x128xf32, #tpu.memory_space<vmem>>) attributes {dimension_semantics = [#tpu.dimension_semantics<parallel>], iteration_bounds = array<i64: 1>, scalar_prefetch = 0 : i64, scratch_operands = 0 : i64, tpu.core_type = #tpu.core_type<tc>, window_params = [{transform_indices = @transform_0, window_bounds = array<i64: 10, 8>}, {transform_indices = @transform_1, window_bounds = array<i64: 10, 8>}, {transform_indices = @transform_2, window_bounds = array<i64: 1, 8>}, {transform_indices = @transform_3, window_bounds = array<i64: 1, 8, 128>}]} {
    %c0 = arith.constant 0 : index
    %c0_0 = arith.constant 0 : index
    %0 = vector.load %arg1[%c0, %c0_0] : memref<10x8xf32, #tpu.memory_space<vmem>>, vector<10x8xf32>
    %1 = arith.fptosi %0 : vector<10x8xf32> to vector<10x8xi32>
    %2 = arith.sitofp %1 : vector<10x8xi32> to vector<10x8xf32>
    %c0_1 = arith.constant 0 : index
    %c0_2 = arith.constant 0 : index
    %3 = vector.load %arg2[%c0_1, %c0_2] : memref<10x8xf32, #tpu.memory_space<vmem>>, vector<10x8xf32>
    %4 = arith.fptosi %3 : vector<10x8xf32> to vector<10x8xi32>
    %5 = arith.sitofp %4 : vector<10x8xi32> to vector<10x8xf32>
    %c0_3 = arith.constant 0 : index
    %c0_4 = arith.constant 0 : index
    %6 = vector.load %arg3[%c0_3, %c0_4] : memref<1x8xi32, #tpu.memory_space<vmem>>, vector<1x8xi32>
    %7 = tpu.iota {dimensions = array<i32: 0>} : vector<10x8xi32>
    %8 = vector.broadcast %6 : vector<1x8xi32> to vector<10x8xi32>
    %9 = arith.cmpi eq, %7, %8 : vector<10x8xi32>
    %10 = tpu.iota {dimensions = array<i32: 1>} : vector<1x8xi32>
    %c8_i32 = arith.constant 8 : i32
    %11 = arith.muli %arg0, %c8_i32 : i32
    %12 = vector.broadcast %11 : i32 to vector<1x8xi32>
    %13 = arith.addi %10, %12 : vector<1x8xi32>
    %c8_i32_5 = arith.constant 8 : i32
    %14 = vector.broadcast %c8_i32_5 : i32 to vector<1x8xi32>
    %15 = arith.cmpi slt, %13, %14 : vector<1x8xi32>
    %cst = arith.constant dense<0xFF800000> : vector<8xf32>
    %16 = vector.multi_reduction <maximumf>, %2, %cst [0] : vector<10x8xf32> to vector<8xf32>
    %17 = vector.shape_cast %16 : vector<8xf32> to vector<1x8xf32>
    %18 = vector.broadcast %17 : vector<1x8xf32> to vector<10x8xf32>
    %19 = arith.subf %2, %18 : vector<10x8xf32>
    %20 = math.exp %19 : vector<10x8xf32>
    %cst_6 = arith.constant dense<0.000000e+00> : vector<8xf32>
    %21 = vector.multi_reduction <add>, %20, %cst_6 [0] : vector<10x8xf32> to vector<8xf32>
    %22 = vector.shape_cast %21 : vector<8xf32> to vector<1x8xf32>
    %23 = math.log %22 : vector<1x8xf32>
    %24 = arith.addf %23, %17 : vector<1x8xf32>
    %cst_7 = arith.constant 0.000000e+00 : f32
    %25 = vector.broadcast %cst_7 : f32 to vector<10x8xf32>
    %26 = arith.select %9, %2, %25 : vector<10x8xi1>, vector<10x8xf32>
    %cst_8 = arith.constant dense<0.000000e+00> : vector<8xf32>
    %27 = vector.multi_reduction <add>, %26, %cst_8 [0] : vector<10x8xf32> to vector<8xf32>
    %28 = vector.shape_cast %27 : vector<8xf32> to vector<1x8xf32>
    %29 = arith.subf %24, %28 : vector<1x8xf32>
    %cst_9 = arith.constant 0.333333343 : f32
    %30 = vector.broadcast %cst_9 : f32 to vector<10x8xf32>
    %31 = arith.mulf %2, %30 : vector<10x8xf32>
    %cst_10 = arith.constant -1.000000e+30 : f32
    %32 = vector.broadcast %cst_10 : f32 to vector<10x8xf32>
    %33 = arith.select %9, %32, %31 : vector<10x8xi1>, vector<10x8xf32>
    %cst_11 = arith.constant 0.333333343 : f32
    %34 = vector.broadcast %cst_11 : f32 to vector<10x8xf32>
    %35 = arith.mulf %5, %34 : vector<10x8xf32>
    %cst_12 = arith.constant -1.000000e+30 : f32
    %36 = vector.broadcast %cst_12 : f32 to vector<10x8xf32>
    %37 = arith.select %9, %36, %35 : vector<10x8xi1>, vector<10x8xf32>
    %cst_13 = arith.constant 0.333333343 : f32
    %38 = vector.broadcast %cst_13 : f32 to vector<1x8xf32>
    %39 = arith.mulf %17, %38 : vector<1x8xf32>
    %40 = vector.broadcast %39 : vector<1x8xf32> to vector<10x8xf32>
    %41 = arith.subf %33, %40 : vector<10x8xf32>
    %42 = math.exp %41 : vector<10x8xf32>
    %cst_14 = arith.constant dense<0.000000e+00> : vector<8xf32>
    %43 = vector.multi_reduction <add>, %42, %cst_14 [0] : vector<10x8xf32> to vector<8xf32>
    %44 = vector.shape_cast %43 : vector<8xf32> to vector<1x8xf32>
    %45 = math.log %44 : vector<1x8xf32>
    %46 = arith.addf %45, %39 : vector<1x8xf32>
    %cst_15 = arith.constant dense<0xFF800000> : vector<8xf32>
    %47 = vector.multi_reduction <maximumf>, %5, %cst_15 [0] : vector<10x8xf32> to vector<8xf32>
    %48 = vector.shape_cast %47 : vector<8xf32> to vector<1x8xf32>
    %cst_16 = arith.constant 0.333333343 : f32
    %49 = vector.broadcast %cst_16 : f32 to vector<1x8xf32>
    %50 = arith.mulf %48, %49 : vector<1x8xf32>
    %51 = vector.broadcast %50 : vector<1x8xf32> to vector<10x8xf32>
    %52 = arith.subf %37, %51 : vector<10x8xf32>
    %53 = math.exp %52 : vector<10x8xf32>
    %cst_17 = arith.constant dense<0.000000e+00> : vector<8xf32>
    %54 = vector.multi_reduction <add>, %53, %cst_17 [0] : vector<10x8xf32> to vector<8xf32>
    %55 = vector.shape_cast %54 : vector<8xf32> to vector<1x8xf32>
    %56 = math.log %55 : vector<1x8xf32>
    %57 = arith.addf %56, %50 : vector<1x8xf32>
    %58 = tpu.reciprocal %55 {approx = true} : vector<1x8xf32> -> vector<1x8xf32>
    %59 = arith.mulf %55, %58 : vector<1x8xf32>
    %cst_18 = arith.constant 2.000000e+00 : f32
    %60 = vector.broadcast %cst_18 : f32 to vector<1x8xf32>
    %61 = arith.subf %60, %59 : vector<1x8xf32>
    %62 = arith.mulf %58, %61 : vector<1x8xf32>
    %63 = vector.broadcast %62 : vector<1x8xf32> to vector<10x8xf32>
    %64 = arith.mulf %53, %63 : vector<10x8xf32>
    %65 = arith.subf %37, %33 : vector<10x8xf32>
    %66 = arith.subf %46, %57 : vector<1x8xf32>
    %67 = vector.broadcast %66 : vector<1x8xf32> to vector<10x8xf32>
    %68 = arith.addf %65, %67 : vector<10x8xf32>
    %69 = arith.mulf %64, %68 : vector<10x8xf32>
    %cst_19 = arith.constant 0.000000e+00 : f32
    %70 = vector.broadcast %cst_19 : f32 to vector<10x8xf32>
    %71 = arith.select %9, %70, %69 : vector<10x8xi1>, vector<10x8xf32>
    %cst_20 = arith.constant dense<0.000000e+00> : vector<8xf32>
    %72 = vector.multi_reduction <add>, %71, %cst_20 [0] : vector<10x8xf32> to vector<8xf32>
    %73 = vector.shape_cast %72 : vector<8xf32> to vector<1x8xf32>
    %cst_21 = arith.constant 9.000000e+00 : f32
    %74 = vector.broadcast %cst_21 : f32 to vector<1x8xf32>
    %75 = arith.mulf %74, %73 : vector<1x8xf32>
    %76 = arith.addf %29, %75 : vector<1x8xf32>
    %cst_22 = arith.constant 0.000000e+00 : f32
    %77 = vector.broadcast %cst_22 : f32 to vector<1x8xf32>
    %78 = arith.select %15, %76, %77 : vector<1x8xi1>, vector<1x8xf32>
    %79 = vector.shape_cast %78 : vector<1x8xf32> to vector<1x1x8xf32>
    %cst_23 = arith.constant dense<0.000000e+00> : vector<1xf32>
    %80 = vector.multi_reduction <add>, %79, %cst_23 [1, 2] : vector<1x1x8xf32> to vector<1xf32>
    %81 = vector.shape_cast %80 : vector<1xf32> to vector<1x1x1xf32>
    %82 = vector.extract %81[0, 0, 0] : f32 from vector<1x1x1xf32>
    %83 = vector.broadcast %82 : f32 to vector<1x8x128xf32>
    %c0_24 = arith.constant 0 : index
    %c0_25 = arith.constant 0 : index
    %c0_26 = arith.constant 0 : index
    %84 = vector.load %arg4[%c0_24, %c0_25, %c0_26] : memref<1x8x128xf32, #tpu.memory_space<vmem>>, vector<1x8x128xf32>
    tpu.vector_store %arg4[%c0_24, %c0_25, %c0_26], %83 {strides = array<i32>} : memref<1x8x128xf32, #tpu.memory_space<vmem>>, vector<1x8x128xf32>,
    return
  }
  func.func @transform_0(%arg0: i32) -> (i32, i32) {
    %c0_i32 = arith.constant 0 : i32
    %c0_i32_0 = arith.constant 0 : i32
    return %c0_i32, %arg0 : i32, i32
  }
  func.func @transform_1(%arg0: i32) -> (i32, i32) {
    %c0_i32 = arith.constant 0 : i32
    %c0_i32_0 = arith.constant 0 : i32
    return %c0_i32, %arg0 : i32, i32
  }
  func.func @transform_2(%arg0: i32) -> (i32, i32) {
    %c0_i32 = arith.constant 0 : i32
    %c0_i32_0 = arith.constant 0 : i32
    return %c0_i32, %arg0 : i32, i32
  }
  func.func @transform_3(%arg0: i32) -> (i32, i32, i32) {
    %c0_i32 = arith.constant 0 : i32
    %c0_i32_0 = arith.constant 0 : i32
    %c0_i32_1 = arith.constant 0 : i32
    return %arg0, %c0_i32, %c0_i32_0 : i32, i32, i32
  }
}

</mosaic_0001>

<bundles_post_ra>
// kernel: tpu_custom_call.1
= control target key start
LH: loop header
LB: loop body
LE: loop exit
PB: predicated region body
PF: predicated region fallthrough
CT: control target
= control target key end

     0   :  { %v28_v3 = vlaneseq  ;;  %s384_s0 = inlined_call_operand.vmem [shape: f32[10,8], index: 0, kind: input, shape index: {}]   ;;  %s385_s1 = inlined_call_operand.vmem [shape: f32[10,8], index: 1, kind: input, shape index: {}]   ;;  %s386_s2 = inlined_call_operand.vmem [shape: s32[1,8], index: 2, kind: input, shape index: {}]   ;;  %s387_s3 = inlined_call_operand.hbm [shape: f32[1,8,128], index: 3, kind: output, shape index: {}]  }
   0x1   :  { %v15_v0 = vld [vmem:[%s384_s0] sm:$0xff]  ;;  %v16_v1 = vld [vmem:[%s384_s0 + $0x8] sm:$0x3] }
   0x2   :  { %v21_v2 = vld [vmem:[%s385_s1] sm:$0xff]  ;;  %v194_v4 = vtrunc.f32 %v15_v0  ;;  %v196_v5 = vtrunc.f32 %v16_v1  ;;  %v22_v6 = vld [vmem:[%s385_s1 + $0x8] sm:$0x3]  ;;  %v283_v9 = vshrl.u32 %v28_v3, 7 }
   0x3   :  { %v198_v7 = vtrunc.f32 %v21_v2  ;;  %v200_v8 = vtrunc.f32 %v22_v6 }
   0x4   :  { %8 = vsyncpa [#allocation3], 0  ;;  %v195_v10 = vcvt.f32.s32 %v194_v4  ;;  %v197_v11 = vcvt.f32.s32 %v196_v5  ;;  %v288_v13 = vld [vmem:[%s386_s2] ss:$0 sm:$0xff]  ;;  %v291_v15 = vadd.s32 8, %v283_v9  ;;  %vm43_vm0 = vcmask 64512  }
   0x5   :  { %v199_v12 = vcvt.f32.s32 %v198_v7  ;;  %v201_v14 = vcvt.f32.s32 %v200_v8  ;;  %vm45_vm1 = vcmask 58368   ;;  %vm35_vm2 = vcmp.eq.s32.totalorder %v283_v9, %v288_v13  ;;  %s249_s1 = smov [#allocation2]  }
   0x6   :  { %v19_v16 = vcvt.s32.f32 %v195_v10  ;;  %v20_v17 = vcvt.s32.f32 %v197_v11  ;;  %vm36_vm3 = vcmp.eq.s32.totalorder %v291_v15, %v288_v13  ;;  %vm166_vm5 = vcmask 57344   ;;  %s185_s2 = sshll.u32 %s249_s1, 4  ;;  %s186_s2 = int_to_ptr.vmem [resolvable:$true] %s185_s2 }
   0x7   :  { %v25_v18 = vcvt.s32.f32 %v199_v12  ;;  %v26_v19 = vcvt.s32.f32 %v201_v14  ;;  %s225_s22 = scalar_lea.vmem %s186_s2, 128  ;;  %p230_p1 = scmp.lt.s32.totalorder %s186_s2, %s186_s2 }
   0x8   :  { %v44_v20 = vsel %vm43_vm0, %v19_v16, -inf  ;;  %v46_v21 = vsel %vm45_vm1, %v20_v17, -inf  ;;  %v72_v22 = vsel %vm35_vm2, %v19_v16, 0.0  ;;  %v73_v23 = vsel %vm36_vm3, %v20_v17, 0.0  ;;  %p226_p0 = scmp.ne.s32.totalorder %s186_s2, %s225_s22  ;;  %p231_p2 = scmp.lt.s32.totalorder %s225_s22, %s225_s22 }
   0x9   :  { %v47_v24 = vmax.f32 %v44_v20, %v46_v21  ;;  %v74_v25 = vsel %vm43_vm0, %v72_v22, 0.0  ;;  %v75_v26 = vsel %vm45_vm1, %v73_v23, 0.0  ;;  %v111_v29 = vsel %vm43_vm0, %v25_v18, -inf }
   0xa   :  { %v307_v27 = vadd.f32 %v75_v26, %v74_v25  ;;  %v112_v30 = vsel %vm45_vm1, %v26_v19, -inf  ;;  %v84_v37 = vmul.f32 0.33333334, %v19_v16  ;;  %v85_v38 = vmul.f32 0.33333334, %v20_v17  ;;  %p232_p3 = por %p231_p2, %p230_p1 }
   0xb   :  { %v48_v28 = vrot.slane %v47_v24, 4  ;;  %v113_v31 = vmax.f32 %v111_v29, %v112_v30  ;;  %v88_v41 = vmul.f32 0.33333334, %v25_v18  ;;  %v89_v42 = vmul.f32 0.33333334, %v26_v19 }
   0xc   :  { %v316_v45 = vsel %vm35_vm2, -1e+30, %v84_v37  ;;  %v321_v46 = vsel %vm36_vm3, -1e+30, %v85_v38  ;;  %v77_v22 = vrot.slane %v307_v27, 4  ;;  %p233_p4 = pnand %p232_p3, %p226_p0 }
   0xd   :  { %v49_v32 = vmax.f32 %v47_v24, %v48_v28  ;;  %v114_v33 = vrot.slane %v113_v31, 4  ;;  %v331_v51 = vsel %vm35_vm2, -1e+30, %v88_v41  ;;  %v336_v52 = vsel %vm36_vm3, -1e+30, %v89_v42 }
   0xe   :  { %v78_v30 = vadd.f32 %v77_v22, %v307_v27 }
   0xf   :  { %v50_v34 = vrot.slane %v49_v32, 2  ;;  %v115_v35 = vmax.f32 %v113_v31, %v114_v33 }
  0x10   :  { %v79_v37 = vrot.slane %v78_v30, 2 }
  0x11   :  { %v51_v36 = vmax.f32 %v49_v32, %v50_v34  ;;  %v116_v39 = vrot.slane %v115_v35, 2 }
  0x12   :  { %v80_v41 = vadd.f32 %v79_v37, %v78_v30 }
  0x13   :  { %v52_v40 = vrot.slane %v51_v36, 1  ;;  %v117_v43 = vmax.f32 %v115_v35, %v116_v39 }
  0x15   :  { %v311_v44 = vmax.f32 %v51_v36, %v52_v40  ;;  %v118_v47 = vrot.slane %v117_v43, 1 }
  0x17   :  { %v54_v48 = vsub.f32 %v19_v16, %v311_v44  ;;  %v55_v49 = vsub.f32 %v20_v17, %v311_v44  ;;  %v326_v50 = vmul.f32 0.33333334, %v311_v44  ;;  %v119_v53 = vmax.f32 %v117_v43, %v118_v47 }
  0x18   :  { %v81_v43 = vrot.slane %v80_v41, 1 }
  0x19   :  { %v56_v54 = vmul.f32 1.442695, %v54_v48  ;;  %v58_v55 = vmul.f32 1.442695, %v55_v49  ;;  %v93_v56 = vsub.f32 %v316_v45, %v326_v50  ;;  %v94_v57 = vsub.f32 %v321_v46, %v326_v50 }
  0x1a   :  { %v342_v58 = vmul.f32 0.33333334, %v119_v53  ;;  %v82_v27 = vadd.f32 %v81_v43, %v80_v41 }
  0x1b   :  { %205 = vpow2.f32 %v56_v54  ;;  %v95_v59 = vmul.f32 1.442695, %v93_v56  ;;  %v97_v60 = vmul.f32 1.442695, %v94_v57 }
  0x1c   :  { %207 = vpow2.f32 %v58_v55  ;;  %v121_v61 = vsub.f32 %v331_v51, %v342_v58  ;;  %v122_v62 = vsub.f32 %v336_v52, %v342_v58 }
  0x1d   :  { %209 = vpow2.f32 %v95_v59 }
  0x1e   :  { %211 = vpow2.f32 %v97_v60  ;;  %v123_v63 = vmul.f32 1.442695, %v121_v61  ;;  %v125_v0 = vmul.f32 1.442695, %v122_v62 }
  0x20   :  { %213 = vpow2.f32 %v123_v63  ;;  %v145_v63 = vsub.f32 %v331_v51, %v316_v45 }
  0x21   :  { %215 = vpow2.f32 %v125_v0  ;;  %v146_v0 = vsub.f32 %v336_v52, %v321_v46 }
  0x25   :  { %v206_v1 = vpop.eup %205 }
  0x26   :  { %v208_v2 = vpop.eup %207  ;;  %v60_v4 = vsel %vm43_vm0, %v206_v1, 0.0 }
  0x27   :  { %v210_v5 = vpop.eup %209  ;;  %v61_v6 = vsel %vm45_vm1, %v208_v2, 0.0 }
  0x28   :  { %v212_v7 = vpop.eup %211  ;;  %v62_v8 = vadd.f32 %v61_v6, %v60_v4  ;;  %v99_v10 = vsel %vm43_vm0, %v210_v5, 0.0 }
  0x29   :  { %v100_v11 = vsel %vm45_vm1, %v212_v7, 0.0 }
  0x2a   :  { %v214_v12 = vpop.eup %213  ;;  %v63_v14 = vrot.slane %v62_v8, 4  ;;  %v101_v16 = vadd.f32 %v100_v11, %v99_v10 }
  0x2b   :  { %v216_v17 = vpop.eup %215  ;;  %v127_v18 = vsel %vm43_vm0, %v214_v12, 0.0 }
  0x2c   :  { %v64_v19 = vadd.f32 %v63_v14, %v62_v8  ;;  %v102_v20 = vrot.slane %v101_v16, 4  ;;  %v128_v21 = vsel %vm45_vm1, %v216_v17, 0.0 }
  0x2d   :  { %v129_v23 = vadd.f32 %v128_v21, %v127_v18 }
  0x2e   :  { %v65_v24 = vrot.slane %v64_v19, 2  ;;  %v103_v25 = vadd.f32 %v102_v20, %v101_v16 }
  0x2f   :  { %v130_v26 = vrot.slane %v129_v23, 4 }
  0x30   :  { %v66_v28 = vadd.f32 %v65_v24, %v64_v19  ;;  %v104_v29 = vrot.slane %v103_v25, 2 }
  0x31   :  { %v131_v31 = vadd.f32 %v130_v26, %v129_v23 }
  0x32   :  { %v67_v32 = vrot.slane %v66_v28, 1  ;;  %v105_v33 = vadd.f32 %v104_v29, %v103_v25 }
  0x33   :  { %v132_v34 = vrot.slane %v131_v31, 2 }
  0x34   :  { %v68_v35 = vadd.f32 %v67_v32, %v66_v28  ;;  %v106_v36 = vrot.slane %v105_v33, 1 }
  0x35   :  { %v133_v38 = vadd.f32 %v132_v34, %v131_v31 }
  0x36   :  { %217 = vlog2.f32 %v68_v35  ;;  %v107_v39 = vadd.f32 %v106_v36, %v105_v33 }
  0x37   :  { %v134_v40 = vrot.slane %v133_v38, 1 }
  0x38   :  { %219 = vlog2.f32 %v107_v39 }
  0x39   :  { %v135_v42 = vadd.f32 %v134_v40, %v133_v38 }
  0x3b   :  { %221 = vlog2.f32 %v135_v42 }
  0x3c   :  { %223 = vrcp.f32 %v135_v42 }
  0x40   :  { %v218_v47 = vpop.eup %217 }
  0x41   :  { %v70_v48 = vmul.f32 0.6931472, %v218_v47 }
  0x42   :  { %v220_v49 = vpop.eup %219 }
  0x43   :  { %v71_v53 = vadd.f32 %v70_v48, %v311_v44  ;;  %v109_v54 = vmul.f32 0.6931472, %v220_v49 }
  0x45   :  { %v222_v55 = vpop.eup %221  ;;  %v83_v56 = vsub.f32 %v71_v53, %v82_v27  ;;  %v110_v59 = vadd.f32 %v109_v54, %v326_v50 }
  0x46   :  { %v224_v57 = vpop.eup %223  ;;  %v137_v60 = vmul.f32 0.6931472, %v222_v55 }
  0x47   :  { %v140_v61 = vmul.f32 %v224_v57, %v135_v42 }
  0x48   :  { %v138_v62 = vadd.f32 %v137_v60, %v342_v58 }
  0x49   :  { %v141_v1 = vsub.f32 2.0, %v140_v61 }
  0x4a   :  { %v147_v2 = vsub.f32 %v110_v59, %v138_v62 }
  0x4b   :  { %v142_v4 = vmul.f32 %v224_v57, %v141_v1 }
  0x4c   :  { %v148_v44 = vadd.f32 %v147_v2, %v145_v63  ;;  %v149_v5 = vadd.f32 %v147_v2, %v146_v0 }
  0x4d   :  { %v143_v6 = vmul.f32 %v214_v12, %v142_v4  ;;  %v144_v7 = vmul.f32 %v216_v17, %v142_v4  ;;  %v38_v17 = vand.u32 127, %v28_v3 }
  0x4f   :  { %v150_v8 = vmul.f32 %v148_v44, %v143_v6  ;;  %v151_v10 = vmul.f32 %v149_v5, %v144_v7  ;;  %vm42_vm4 = vcmp.lt.s32.totalorder %v38_v17, 8 }
  0x51   :  { %v152_v50 = vsel %vm35_vm2, 0.0, %v150_v8  ;;  %v153_v45 = vsel %vm36_vm3, 0.0, %v151_v10 }
  0x52   :  { %v154_v51 = vsel %vm43_vm0, %v152_v50, 0.0  ;;  %v155_v46 = vsel %vm45_vm1, %v153_v45, 0.0 }
  0x53   :  { %v156_v52 = vadd.f32 %v155_v46, %v154_v51 }
  0x55   :  { %v157_v58 = vrot.slane %v156_v52, 4 }
  0x57   :  { %v158_v11 = vadd.f32 %v157_v58, %v156_v52 }
  0x59   :  { %v159_v14 = vrot.slane %v158_v11, 2 }
  0x5b   :  { %v160_v12 = vadd.f32 %v159_v14, %v158_v11 }
  0x5d   :  { %v161_v16 = vrot.slane %v160_v12, 1 }
  0x5f   :  { %v162_v18 = vadd.f32 %v161_v16, %v160_v12 }
  0x61   :  { %v163_v19 = vmul.f32 9.0, %v162_v18 }
  0x63   :  { %v164_v9 = vadd.f32 %v163_v19, %v83_v56 }
  0x65   :  { %v165_v20 = vsel %vm42_vm4, %v164_v9, 0.0 }
  0x66   :  { %v167_v13 = vsel %vm166_vm5, %v165_v20, 0.0 }
  0x67   :  { %168 = vadd.xlane.f32.xlu0 %v167_v13 }
  0xf4   :  { %v169_v15 = vpop.xlane.xlu0 %168 }
  0xf5   :  { %v170_v21 = vrot.slane %v169_v15, 4 }
  0xf7   :  { %v171_v22 = vadd.f32 %v170_v21, %v169_v15 }
  0xf9   :  { %v172_v23 = vrot.slane %v171_v22, 2 }
  0xfb   :  { %v173_v24 = vadd.f32 %v172_v23, %v171_v22 }
  0xfd   :  { %v174_v25 = vrot.slane %v173_v24, 1 }
  0xff   :  { %v175_v26 = vadd.f32 %v174_v25, %v173_v24 }
 0x101   :  { %202 = vpush %v175_v26 }
 0x132   :  { %s203_s21 = spop %202 }
 0x133   :  { %v177_v3 = vstv %s203_s21 }
 0x134   :  { %178 = vst [vmem:[#allocation2] sm:$0xff] %v177_v3 }
 0x135   :  { %236 = shalt.err (!%p233_p4)
}
 0x136   :  { %s237_s25 = scalar_lea.hbm %s387_s3, 128 }
 0x137   :  { %p238_p5 = scmp.ne.s32.totalorder %s387_s3, %s237_s25  ;;  %p241_p6 = scmp.lt.u32.totalorder %s237_s25, %s387_s3 }
 0x139   :  { %p243_p7 = pnand %p241_p6, %p238_p5 }
 0x13b   :  { %246 = shalt.err (!%p243_p7)
}
 0x13c   :  { %188 = dma.vmem_to_hbm [thread:$0]  %s186_s2, 128, %s387_s3, [#allocation3]  }
 0x13d   :  { %247 = dma.done.wait [#allocation3], 128  }
 0x13e   :  { %248 = vsyncadd [#allocation3], 4294967168 }
 0x13f   :  { %192 = vsyncpa [#allocation3], 1 }

</bundles_post_ra>
